<compile_context>
chip_gen: v6e
topology: v6e:2x2x1
jax: 0.10.0
libtpu: 0.0.40
codegen_flags: <defaults>
</compile_context>

<pallas_src>
import math

import jax
import jax.numpy as jnp
from jax import lax
from jax.experimental import pallas as pl
from jax.experimental.pallas import tpu as pltpu

# ---- model hyper-parameters (small, deterministic synthetic base_model) ----
B, S = 2, 8          # batch, sequence
H = 32               # hidden size
NH, DH = 2, 16       # heads, head dim
F = 64               # FFN hidden
V = 128              # vocab size (lane-dense)
EPS = 1e-5
BS = B * S

# rough advisory cost for the XLA scheduler
_COST = pl.CostEstimate(flops=560_000, transcendentals=3_600, bytes_accessed=150_000)


def _layernorm(h, g, b):
    mu = jnp.mean(h, axis=-1, keepdims=True)
    var = jnp.mean((h - mu) ** 2, axis=-1, keepdims=True)
    return (h - mu) * lax.rsqrt(var + EPS) * g + b


# -------------------- shared in-kernel transformer body --------------------
def _logits_2d(tok, fc, wrow_ref, wcol_ref):
    """tok: (BS, 256) int32 value; fc: (BS, 384) f32 value.  Returns (BS, V) f32."""
    ids = tok[:, 0:1]                                             # (BS, 1) int32
    amask_row = pltpu.bitcast(tok[0:1, 128:128 + BS], jnp.float32)  # (1, BS) f32

    # small params: one row per parameter in lanes 0:128 of fconst
    ln1g, ln1b = fc[0:1, 0:H], fc[1:2, 0:H]
    bqkv = fc[2:3, 0:3 * H]
    bo = fc[3:4, 0:H]
    ln2g, ln2b = fc[4:5, 0:H], fc[5:6, 0:H]
    b1 = fc[6:7, 0:F]
    b2 = fc[7:8, 0:H]
    lnfg, lnfb = fc[8:9, 0:H], fc[9:10, 0:H]
    bias_static = fc[:, 128:128 + BS]                             # (BS, BS) 0 / -1e9

    # weights: 128-lane-aligned slot slices (free)
    wqkv = wrow_ref[:, 0:3 * H]            # (H, 3H) bf16, q columns pre-scaled
    wo = wrow_ref[:, 128:128 + H]          # (H, H)
    w1 = wrow_ref[:, 256:256 + F]          # (H, F)
    wlm = wrow_ref[:, 384:384 + V]         # (H, V)
    wte = wcol_ref[:, 0:H]                 # (V, H)
    w2 = wcol_ref[0:F, 128:128 + H]        # (F, H)
    wpe = wcol_ref[F:F + BS, 128:128 + H]  # (BS, H)  pre-tiled position emb

    # --- token embedding: in-kernel one-hot gather on the MXU ---
    onehot = (lax.broadcasted_iota(jnp.int32, (BS, V), 1) == ids).astype(jnp.bfloat16)
    x = jnp.dot(onehot, wte, preferred_element_type=jnp.float32) + wpe.astype(jnp.float32)

    # --- attention block (per-head unrolled, 1/sqrt(DH) already folded into wqkv) ---
    h1 = _layernorm(x, ln1g, ln1b)
    qkv = jnp.dot(h1.astype(jnp.bfloat16), wqkv,
                  preferred_element_type=jnp.float32) + bqkv       # (BS, 3H)

    # combine static (same-seq & causal) bias with the runtime key-validity mask
    bias = bias_static + (amask_row - 1.0) * 1e9                   # (BS, BS)

    attn_out = jnp.zeros((BS, H), jnp.float32)
    for h in range(NH):
        qh = qkv[:, h * DH:(h + 1) * DH]                           # (BS, DH)
        kh = qkv[:, H + h * DH:H + (h + 1) * DH]
        vh = qkv[:, 2 * H + h * DH:2 * H + (h + 1) * DH]
        s = lax.dot_general(qh, kh, (((1,), (1,)), ((), ())),
                            preferred_element_type=jnp.float32) + bias
        e = jnp.exp(s - jnp.max(s, axis=-1, keepdims=True))
        p = e * pl.reciprocal(jnp.sum(e, axis=-1, keepdims=True), approx=True)
        ctx = jnp.dot(p, vh, preferred_element_type=jnp.float32)   # (BS, DH)
        woh = wo[h * DH:(h + 1) * DH, :]                           # (DH, H) bf16
        attn_out = attn_out + jnp.dot(ctx.astype(jnp.bfloat16), woh,
                                      preferred_element_type=jnp.float32)
    x2 = x + attn_out + bo

    # --- MLP block ---
    h2 = _layernorm(x2, ln2g, ln2b)
    ff = jax.nn.gelu(jnp.dot(h2.astype(jnp.bfloat16), w1,
                             preferred_element_type=jnp.float32) + b1)
    x3 = x2 + jnp.dot(ff.astype(jnp.bfloat16), w2,
                      preferred_element_type=jnp.float32) + b2

    # --- final LN + LM head (padded query rows still produce logits, as in HF) ---
    hf = _layernorm(x3, lnfg, lnfb)
    return jnp.dot(hf.astype(jnp.bfloat16), wlm,
                   preferred_element_type=jnp.float32)             # (BS, V) f32


# -------------------- kernel 1: forward -> logits --------------------
def forward_kernel(tok_ref, fc_ref, wrow_ref, wcol_ref, logits_ref):
    logits_ref[...] = _logits_2d(tok_ref[...], fc_ref[...], wrow_ref, wcol_ref)


# ------------- kernel 2: fused transformer + masked per-seq CE -------------
def loss_kernel(tok_ref, fc_ref, wrow_ref, wcol_ref, losses_ref):
    tok = tok_ref[...]
    fc = fc_ref[...]
    logits = _logits_2d(tok, fc, wrow_ref, wcol_ref)               # (BS, V) f32

    labels = tok[:, 1:2]                                           # (BS, 1) int32
    lmask = pltpu.bitcast(tok[:, 2:3], jnp.float32)                # (BS, 1) f32
    selT = fc[:, 256:256 + B]                                      # (BS, B) one-hot

    m = jnp.max(logits, axis=-1, keepdims=True)
    lse = jnp.log(jnp.sum(jnp.exp(logits - m), axis=-1, keepdims=True)) + m
    lab_oh = (lax.broadcasted_iota(jnp.int32, (BS, V), 1) == labels).astype(jnp.float32)
    label_logit = jnp.sum(logits * lab_oh, axis=-1, keepdims=True)
    # CrossEntropyLoss(reduction='none') with ignore_index: ignored labels give 0 loss.
    valid = (labels >= 0).astype(jnp.float32)
    token_loss = (lse - label_logit) * lmask * valid               # (BS, 1)

    # per-sequence sum(loss*mask)/sum(mask) via the constant selector matrix
    num = lax.dot_general(selT, token_loss, (((0,), (0,)), ((), ())),
                          preferred_element_type=jnp.float32)      # (B, 1)
    den = lax.dot_general(selT, lmask, (((0,), (0,)), ((), ())),
                          preferred_element_type=jnp.float32)      # (B, 1)
    losses_ref[...] = num / jnp.maximum(den, 1e-6)                 # exact divide


# -------------------- host-side parameter / input packing --------------------
def init_params(key):
    ks = jax.random.split(key, 7)
    s = 0.02
    wte = jax.random.normal(ks[0], (V, H), jnp.float32) * s
    wpe = jax.random.normal(ks[1], (S, H), jnp.float32) * s
    wqkv = jax.random.normal(ks[2], (H, 3 * H), jnp.float32) * s
    wo = jax.random.normal(ks[3], (H, H), jnp.float32) * s
    w1 = jax.random.normal(ks[4], (H, F), jnp.float32) * s
    w2 = jax.random.normal(ks[5], (F, H), jnp.float32) * s
    wlm = jax.random.normal(ks[6], (H, V), jnp.float32) * s

    # fold 1/sqrt(DH) into the q columns / q bias (one-time host transform)
    scale = 1.0 / math.sqrt(DH)
    wqkv = wqkv.at[:, :H].multiply(scale)
    bqkv = jnp.zeros((3 * H,), jnp.float32)
    bqkv = bqkv.at[:H].multiply(scale)   # no-op on zeros; kept for clarity

    # fconst slab: small params (slot 0, one row each) | static attn bias | seq selector
    fc = jnp.zeros((BS, 3 * 128), jnp.float32)
    small_rows = [
        jnp.ones((H,)), jnp.zeros((H,)),        # ln1 gamma / beta
        bqkv, jnp.zeros((H,)),                  # qkv bias, out-proj bias
        jnp.ones((H,)), jnp.zeros((H,)),        # ln2 gamma / beta
        jnp.zeros((F,)), jnp.zeros((H,)),       # ffn biases
        jnp.ones((H,)), jnp.zeros((H,)),        # final ln gamma / beta
    ]
    for r, vec in enumerate(small_rows):
        fc = fc.at[r, :vec.shape[0]].set(vec)
    r = jnp.arange(BS)[:, None]
    c = jnp.arange(BS)[None, :]
    allowed = ((r // S) == (c // S)) & ((r % S) >= (c % S))        # same seq & causal
    fc = fc.at[:, 128:128 + BS].set(jnp.where(allowed, 0.0, -1e9))
    selT = (jnp.arange(BS)[:, None] // S == jnp.arange(B)[None, :]).astype(jnp.float32)
    fc = fc.at[:, 256:256 + B].set(selT)

    # wrow slab: all H-row weights side by side in 128-lane-aligned slots
    wrow = jnp.zeros((H, 4 * 128), jnp.bfloat16)
    wrow = wrow.at[:, 0:3 * H].set(wqkv.astype(jnp.bfloat16))
    wrow = wrow.at[:, 128:128 + H].set(wo.astype(jnp.bfloat16))
    wrow = wrow.at[:, 256:256 + F].set(w1.astype(jnp.bfloat16))
    wrow = wrow.at[:, 384:384 + V].set(wlm.astype(jnp.bfloat16))

    # wcol slab: embedding table | (w2 rows 0:F, pre-tiled wpe rows F:F+BS)
    wcol = jnp.zeros((V, 2 * 128), jnp.bfloat16)
    wcol = wcol.at[:, 0:H].set(wte.astype(jnp.bfloat16))
    wcol = wcol.at[0:F, 128:128 + H].set(w2.astype(jnp.bfloat16))
    wcol = wcol.at[F:F + BS, 128:128 + H].set(jnp.tile(wpe, (B, 1)).astype(jnp.bfloat16))

    return dict(fconst=fc, wrow=wrow, wcol=wcol)


def _pack_tok(input_ids, attention_mask, label=None, loss_mask=None):
    """Pack per-call data into a single (BS, 256) int32 slab (one DMA).
    Lane 0 = ids, lane 1 = labels, lane 2 = loss_mask (f32 bits);
    row 0, lanes 128:128+BS = attention_mask (f32 bits) laid out as a key row."""
    ids = input_ids.reshape(BS).astype(jnp.int32)
    lab = (label.reshape(BS).astype(jnp.int32) if label is not None
           else jnp.zeros((BS,), jnp.int32))
    lm_f = (loss_mask.reshape(BS).astype(jnp.float32) if loss_mask is not None
            else jnp.zeros((BS,), jnp.float32))
    lm_bits = lax.bitcast_convert_type(lm_f, jnp.int32)
    am_bits = lax.bitcast_convert_type(
        attention_mask.reshape(BS).astype(jnp.float32), jnp.int32)
    tok = jnp.zeros((BS, 256), jnp.int32)
    tok = tok.at[:, 0:3].set(jnp.stack([ids, lab, lm_bits], axis=1))
    tok = tok.at[0, 128:128 + BS].set(am_bits)
    return tok


def _vmem_spec():
    return pl.BlockSpec(memory_space=pltpu.MemorySpace.VMEM)


# -------------------- host-side wrappers --------------------
def forward(params, input_ids, attention_mask):
    """TransformerWrapper.forward -> logits of shape (B, S, V)."""
    tok = _pack_tok(input_ids, attention_mask)
    logits = pl.pallas_call(
        forward_kernel,
        out_shape=jax.ShapeDtypeStruct((BS, V), jnp.float32),
        in_specs=[_vmem_spec() for _ in range(4)],
        out_specs=_vmem_spec(),
        cost_estimate=_COST,
    )(tok, params["fconst"], params["wrow"], params["wcol"])
    return logits.reshape(B, S, V)


def compute_loss(params, input_ids, attention_mask, label, loss_mask):
    """TransformerWrapper.compute_loss -> (scalar loss, per-sequence losses (B,))."""
    tok = _pack_tok(input_ids, attention_mask, label, loss_mask)
    seq = pl.pallas_call(
        loss_kernel,
        out_shape=jax.ShapeDtypeStruct((B, 1), jnp.float32),
        in_specs=[_vmem_spec() for _ in range(4)],
        out_specs=_vmem_spec(),
        cost_estimate=_COST,
    )(tok, params["fconst"], params["wrow"], params["wcol"])
    losses = seq.reshape(B)
    loss = jnp.mean(losses)
    return loss, losses


if __name__ == "__main__":
    key = jax.random.PRNGKey(0)
    pkey, ikey, lkey = jax.random.split(key, 3)
    params = init_params(pkey)

    input_ids = jax.random.randint(ikey, (B, S), 0, V, dtype=jnp.int32)
    label = jax.random.randint(lkey, (B, S), 0, V, dtype=jnp.int32)
    # last two tokens of sequence 1 are padding
    attention_mask = jnp.array([[1.0] * S, [1.0] * (S - 2) + [0.0, 0.0]], dtype=jnp.float32)
    loss_mask = attention_mask

    logits = forward(params, input_ids, attention_mask)
    loss, losses = compute_loss(params, input_ids, attention_mask, label, loss_mask)
    jax.block_until_ready((logits, loss, losses))

    assert logits.shape == (B, S, V)
    assert losses.shape == (B,)
    assert bool(jnp.all(jnp.isfinite(logits)))
    assert bool(jnp.all(jnp.isfinite(losses)))
    assert bool(jnp.isfinite(loss))
    print("KERNEL_OK")
</pallas_src>

<mosaic_0001>
module attributes {stable_mosaic.version = 11 : i64} {
  func.func @forward_kernel(%arg0: memref<16x256xi32, #tpu.memory_space<vmem>>, %arg1: memref<16x384xf32, #tpu.memory_space<vmem>>, %arg2: memref<32x512xbf16, #tpu.memory_space<vmem>>, %arg3: memref<128x256xbf16, #tpu.memory_space<vmem>>, %arg4: memref<16x128xf32, #tpu.memory_space<vmem>>) attributes {dimension_semantics = [], scalar_prefetch = 0 : i64, scratch_operands = 0 : i64, tpu.core_type = #tpu.core_type<tc>} {
    %c0 = arith.constant 0 : index
    %c0_0 = arith.constant 0 : index
    %0 = vector.load %arg0[%c0, %c0_0] : memref<16x256xi32, #tpu.memory_space<vmem>>, vector<16x256xi32>
    %c0_1 = arith.constant 0 : index
    %c0_2 = arith.constant 0 : index
    %1 = vector.load %arg1[%c0_1, %c0_2] : memref<16x384xf32, #tpu.memory_space<vmem>>, vector<16x384xf32>
    %2 = vector.extract_strided_slice %0 {offsets = [0, 0], sizes = [16, 1], strides = [1, 1]} : vector<16x256xi32> to vector<16x1xi32>
    %3 = vector.extract_strided_slice %0 {offsets = [0, 128], sizes = [1, 16], strides = [1, 1]} : vector<16x256xi32> to vector<1x16xi32>
    %4 = tpu.bitcast %3 : vector<1x16xi32> -> vector<1x16xf32>
    %5 = vector.extract_strided_slice %1 {offsets = [0, 0], sizes = [1, 32], strides = [1, 1]} : vector<16x384xf32> to vector<1x32xf32>
    %6 = vector.extract_strided_slice %1 {offsets = [1, 0], sizes = [1, 32], strides = [1, 1]} : vector<16x384xf32> to vector<1x32xf32>
    %7 = vector.extract_strided_slice %1 {offsets = [2, 0], sizes = [1, 96], strides = [1, 1]} : vector<16x384xf32> to vector<1x96xf32>
    %8 = vector.extract_strided_slice %1 {offsets = [3, 0], sizes = [1, 32], strides = [1, 1]} : vector<16x384xf32> to vector<1x32xf32>
    %9 = vector.extract_strided_slice %1 {offsets = [4, 0], sizes = [1, 32], strides = [1, 1]} : vector<16x384xf32> to vector<1x32xf32>
    %10 = vector.extract_strided_slice %1 {offsets = [5, 0], sizes = [1, 32], strides = [1, 1]} : vector<16x384xf32> to vector<1x32xf32>
    %11 = vector.extract_strided_slice %1 {offsets = [6, 0], sizes = [1, 64], strides = [1, 1]} : vector<16x384xf32> to vector<1x64xf32>
    %12 = vector.extract_strided_slice %1 {offsets = [7, 0], sizes = [1, 32], strides = [1, 1]} : vector<16x384xf32> to vector<1x32xf32>
    %13 = vector.extract_strided_slice %1 {offsets = [8, 0], sizes = [1, 32], strides = [1, 1]} : vector<16x384xf32> to vector<1x32xf32>
    %14 = vector.extract_strided_slice %1 {offsets = [9, 0], sizes = [1, 32], strides = [1, 1]} : vector<16x384xf32> to vector<1x32xf32>
    %15 = vector.extract_strided_slice %1 {offsets = [0, 128], sizes = [16, 16], strides = [1, 1]} : vector<16x384xf32> to vector<16x16xf32>
    %c0_3 = arith.constant 0 : index
    %c0_4 = arith.constant 0 : index
    %16 = vector.load %arg2[%c0_3, %c0_4] : memref<32x512xbf16, #tpu.memory_space<vmem>>, vector<32x96xbf16>
    %c0_5 = arith.constant 0 : index
    %c128 = arith.constant 128 : index
    %17 = vector.load %arg2[%c0_5, %c128] : memref<32x512xbf16, #tpu.memory_space<vmem>>, vector<32x32xbf16>
    %c0_6 = arith.constant 0 : index
    %c256 = arith.constant 256 : index
    %18 = vector.load %arg2[%c0_6, %c256] : memref<32x512xbf16, #tpu.memory_space<vmem>>, vector<32x64xbf16>
    %c0_7 = arith.constant 0 : index
    %c384 = arith.constant 384 : index
    %19 = vector.load %arg2[%c0_7, %c384] : memref<32x512xbf16, #tpu.memory_space<vmem>>, vector<32x128xbf16>
    %c0_8 = arith.constant 0 : index
    %c0_9 = arith.constant 0 : index
    %20 = vector.load %arg3[%c0_8, %c0_9] : memref<128x256xbf16, #tpu.memory_space<vmem>>, vector<128x32xbf16>
    %c0_10 = arith.constant 0 : index
    %c128_11 = arith.constant 128 : index
    %21 = vector.load %arg3[%c0_10, %c128_11] : memref<128x256xbf16, #tpu.memory_space<vmem>>, vector<64x32xbf16>
    %c64 = arith.constant 64 : index
    %c128_12 = arith.constant 128 : index
    %22 = vector.load %arg3[%c64, %c128_12] : memref<128x256xbf16, #tpu.memory_space<vmem>>, vector<16x32xbf16>
    %23 = tpu.iota {dimensions = array<i32: 1>} : vector<16x128xi32>
    %24 = vector.broadcast %2 : vector<16x1xi32> to vector<16x128xi32>
    %25 = arith.cmpi eq, %23, %24 : vector<16x128xi32>
    %26 = arith.extui %25 : vector<16x128xi1> to vector<16x128xi32>
    %27 = arith.sitofp %26 : vector<16x128xi32> to vector<16x128xf32>
    %28 = arith.truncf %27 : vector<16x128xf32> to vector<16x128xbf16>
    %cst = arith.constant dense<0.000000e+00> : vector<16x32xf32>
    %29 = tpu.matmul %28, %20, %cst {dimension_numbers = #tpu.dot_dimension_numbers<[1], [0], [0], [1], [0, 0, 1, 1], [], []>} : vector<16x128xbf16>, vector<128x32xbf16>, vector<16x32xf32> -> vector<16x32xf32>
    %30 = arith.extf %22 : vector<16x32xbf16> to vector<16x32xf32>
    %31 = arith.addf %29, %30 : vector<16x32xf32>
    %cst_13 = arith.constant dense<0.000000e+00> : vector<16xf32>
    %32 = vector.multi_reduction <add>, %31, %cst_13 [1] : vector<16x32xf32> to vector<16xf32>
    %33 = vector.shape_cast %32 : vector<16xf32> to vector<16x1xf32>
    %cst_14 = arith.constant 3.200000e+01 : f32
    %34 = vector.broadcast %cst_14 : f32 to vector<16x1xf32>
    %35 = arith.divf %33, %34 : vector<16x1xf32>
    %36 = vector.broadcast %35 : vector<16x1xf32> to vector<16x32xf32>
    %37 = arith.subf %31, %36 : vector<16x32xf32>
    %38 = arith.mulf %37, %37 : vector<16x32xf32>
    %cst_15 = arith.constant dense<0.000000e+00> : vector<16xf32>
    %39 = vector.multi_reduction <add>, %38, %cst_15 [1] : vector<16x32xf32> to vector<16xf32>
    %40 = vector.shape_cast %39 : vector<16xf32> to vector<16x1xf32>
    %cst_16 = arith.constant 3.200000e+01 : f32
    %41 = vector.broadcast %cst_16 : f32 to vector<16x1xf32>
    %42 = arith.divf %40, %41 : vector<16x1xf32>
    %43 = vector.broadcast %35 : vector<16x1xf32> to vector<16x32xf32>
    %44 = arith.subf %31, %43 : vector<16x32xf32>
    %cst_17 = arith.constant 9.99999974E-6 : f32
    %45 = vector.broadcast %cst_17 : f32 to vector<16x1xf32>
    %46 = arith.addf %42, %45 : vector<16x1xf32>
    %47 = math.rsqrt %46 : vector<16x1xf32>
    %48 = vector.broadcast %47 : vector<16x1xf32> to vector<16x32xf32>
    %49 = arith.mulf %44, %48 : vector<16x32xf32>
    %50 = vector.broadcast %5 : vector<1x32xf32> to vector<16x32xf32>
    %51 = arith.mulf %49, %50 : vector<16x32xf32>
    %52 = vector.broadcast %6 : vector<1x32xf32> to vector<16x32xf32>
    %53 = arith.addf %51, %52 : vector<16x32xf32>
    %54 = arith.truncf %53 : vector<16x32xf32> to vector<16x32xbf16>
    %cst_18 = arith.constant dense<0.000000e+00> : vector<16x96xf32>
    %55 = tpu.matmul %54, %16, %cst_18 {dimension_numbers = #tpu.dot_dimension_numbers<[1], [0], [0], [1], [0, 0, 1, 1], [], []>} : vector<16x32xbf16>, vector<32x96xbf16>, vector<16x96xf32> -> vector<16x96xf32>
    %56 = vector.broadcast %7 : vector<1x96xf32> to vector<16x96xf32>
    %57 = arith.addf %55, %56 : vector<16x96xf32>
    %cst_19 = arith.constant 1.000000e+00 : f32
    %58 = vector.broadcast %cst_19 : f32 to vector<1x16xf32>
    %59 = arith.subf %4, %58 : vector<1x16xf32>
    %cst_20 = arith.constant 1.000000e+09 : f32
    %60 = vector.broadcast %cst_20 : f32 to vector<1x16xf32>
    %61 = arith.mulf %59, %60 : vector<1x16xf32>
    %62 = vector.broadcast %61 : vector<1x16xf32> to vector<16x16xf32>
    %63 = arith.addf %15, %62 : vector<16x16xf32>
    %cst_21 = arith.constant 0.000000e+00 : f32
    %64 = vector.broadcast %cst_21 : f32 to vector<16x32xf32>
    %65 = vector.extract_strided_slice %57 {offsets = [0, 0], sizes = [16, 16], strides = [1, 1]} : vector<16x96xf32> to vector<16x16xf32>
    %66 = vector.extract_strided_slice %57 {offsets = [0, 32], sizes = [16, 16], strides = [1, 1]} : vector<16x96xf32> to vector<16x16xf32>
    %67 = vector.extract_strided_slice %57 {offsets = [0, 64], sizes = [16, 16], strides = [1, 1]} : vector<16x96xf32> to vector<16x16xf32>
    %cst_22 = arith.constant dense<0.000000e+00> : vector<16x16xf32>
    %68 = tpu.matmul %65, %66, %cst_22 {dimension_numbers = #tpu.dot_dimension_numbers<[1], [1], [0], [0], [0, 0, 1, 0], [], []>} : vector<16x16xf32>, vector<16x16xf32>, vector<16x16xf32> -> vector<16x16xf32>
    %69 = arith.addf %68, %63 : vector<16x16xf32>
    %cst_23 = arith.constant dense<0xFF800000> : vector<16xf32>
    %70 = vector.multi_reduction <maximumf>, %69, %cst_23 [1] : vector<16x16xf32> to vector<16xf32>
    %71 = vector.shape_cast %70 : vector<16xf32> to vector<16x1xf32>
    %72 = vector.broadcast %71 : vector<16x1xf32> to vector<16x16xf32>
    %73 = arith.subf %69, %72 : vector<16x16xf32>
    %74 = math.exp %73 : vector<16x16xf32>
    %cst_24 = arith.constant dense<0.000000e+00> : vector<16xf32>
    %75 = vector.multi_reduction <add>, %74, %cst_24 [1] : vector<16x16xf32> to vector<16xf32>
    %76 = vector.shape_cast %75 : vector<16xf32> to vector<16x1xf32>
    %77 = tpu.reciprocal %76 {approx = true} : vector<16x1xf32> -> vector<16x1xf32>
    %78 = vector.broadcast %77 : vector<16x1xf32> to vector<16x16xf32>
    %79 = arith.mulf %74, %78 : vector<16x16xf32>
    %cst_25 = arith.constant dense<0.000000e+00> : vector<16x16xf32>
    %80 = tpu.matmul %79, %67, %cst_25 {dimension_numbers = #tpu.dot_dimension_numbers<[1], [0], [0], [1], [0, 0, 1, 1], [], []>} : vector<16x16xf32>, vector<16x16xf32>, vector<16x16xf32> -> vector<16x16xf32>
    %81 = vector.extract_strided_slice %17 {offsets = [0, 0], sizes = [16, 32], strides = [1, 1]} : vector<32x32xbf16> to vector<16x32xbf16>
    %82 = arith.truncf %80 : vector<16x16xf32> to vector<16x16xbf16>
    %cst_26 = arith.constant dense<0.000000e+00> : vector<16x32xf32>
    %83 = tpu.matmul %82, %81, %cst_26 {dimension_numbers = #tpu.dot_dimension_numbers<[1], [0], [0], [1], [0, 0, 1, 1], [], []>} : vector<16x16xbf16>, vector<16x32xbf16>, vector<16x32xf32> -> vector<16x32xf32>
    %84 = arith.addf %64, %83 : vector<16x32xf32>
    %85 = vector.extract_strided_slice %57 {offsets = [0, 16], sizes = [16, 16], strides = [1, 1]} : vector<16x96xf32> to vector<16x16xf32>
    %86 = vector.extract_strided_slice %57 {offsets = [0, 48], sizes = [16, 16], strides = [1, 1]} : vector<16x96xf32> to vector<16x16xf32>
    %87 = vector.extract_strided_slice %57 {offsets = [0, 80], sizes = [16, 16], strides = [1, 1]} : vector<16x96xf32> to vector<16x16xf32>
    %cst_27 = arith.constant dense<0.000000e+00> : vector<16x16xf32>
    %88 = tpu.matmul %85, %86, %cst_27 {dimension_numbers = #tpu.dot_dimension_numbers<[1], [1], [0], [0], [0, 0, 1, 0], [], []>} : vector<16x16xf32>, vector<16x16xf32>, vector<16x16xf32> -> vector<16x16xf32>
    %89 = arith.addf %88, %63 : vector<16x16xf32>
    %cst_28 = arith.constant dense<0xFF800000> : vector<16xf32>
    %90 = vector.multi_reduction <maximumf>, %89, %cst_28 [1] : vector<16x16xf32> to vector<16xf32>
    %91 = vector.shape_cast %90 : vector<16xf32> to vector<16x1xf32>
    %92 = vector.broadcast %91 : vector<16x1xf32> to vector<16x16xf32>
    %93 = arith.subf %89, %92 : vector<16x16xf32>
    %94 = math.exp %93 : vector<16x16xf32>
    %cst_29 = arith.constant dense<0.000000e+00> : vector<16xf32>
    %95 = vector.multi_reduction <add>, %94, %cst_29 [1] : vector<16x16xf32> to vector<16xf32>
    %96 = vector.shape_cast %95 : vector<16xf32> to vector<16x1xf32>
    %97 = tpu.reciprocal %96 {approx = true} : vector<16x1xf32> -> vector<16x1xf32>
    %98 = vector.broadcast %97 : vector<16x1xf32> to vector<16x16xf32>
    %99 = arith.mulf %94, %98 : vector<16x16xf32>
    %cst_30 = arith.constant dense<0.000000e+00> : vector<16x16xf32>
    %100 = tpu.matmul %99, %87, %cst_30 {dimension_numbers = #tpu.dot_dimension_numbers<[1], [0], [0], [1], [0, 0, 1, 1], [], []>} : vector<16x16xf32>, vector<16x16xf32>, vector<16x16xf32> -> vector<16x16xf32>
    %101 = vector.extract_strided_slice %17 {offsets = [16, 0], sizes = [16, 32], strides = [1, 1]} : vector<32x32xbf16> to vector<16x32xbf16>
    %102 = arith.truncf %100 : vector<16x16xf32> to vector<16x16xbf16>
    %cst_31 = arith.constant dense<0.000000e+00> : vector<16x32xf32>
    %103 = tpu.matmul %102, %101, %cst_31 {dimension_numbers = #tpu.dot_dimension_numbers<[1], [0], [0], [1], [0, 0, 1, 1], [], []>} : vector<16x16xbf16>, vector<16x32xbf16>, vector<16x32xf32> -> vector<16x32xf32>
    %104 = arith.addf %84, %103 : vector<16x32xf32>
    %105 = arith.addf %31, %104 : vector<16x32xf32>
    %106 = vector.broadcast %8 : vector<1x32xf32> to vector<16x32xf32>
    %107 = arith.addf %105, %106 : vector<16x32xf32>
    %cst_32 = arith.constant dense<0.000000e+00> : vector<16xf32>
    %108 = vector.multi_reduction <add>, %107, %cst_32 [1] : vector<16x32xf32> to vector<16xf32>
    %109 = vector.shape_cast %108 : vector<16xf32> to vector<16x1xf32>
    %cst_33 = arith.constant 3.200000e+01 : f32
    %110 = vector.broadcast %cst_33 : f32 to vector<16x1xf32>
    %111 = arith.divf %109, %110 : vector<16x1xf32>
    %112 = vector.broadcast %111 : vector<16x1xf32> to vector<16x32xf32>
    %113 = arith.subf %107, %112 : vector<16x32xf32>
    %114 = arith.mulf %113, %113 : vector<16x32xf32>
    %cst_34 = arith.constant dense<0.000000e+00> : vector<16xf32>
    %115 = vector.multi_reduction <add>, %114, %cst_34 [1] : vector<16x32xf32> to vector<16xf32>
    %116 = vector.shape_cast %115 : vector<16xf32> to vector<16x1xf32>
    %cst_35 = arith.constant 3.200000e+01 : f32
    %117 = vector.broadcast %cst_35 : f32 to vector<16x1xf32>
    %118 = arith.divf %116, %117 : vector<16x1xf32>
    %119 = vector.broadcast %111 : vector<16x1xf32> to vector<16x32xf32>
    %120 = arith.subf %107, %119 : vector<16x32xf32>
    %cst_36 = arith.constant 9.99999974E-6 : f32
    %121 = vector.broadcast %cst_36 : f32 to vector<16x1xf32>
    %122 = arith.addf %118, %121 : vector<16x1xf32>
    %123 = math.rsqrt %122 : vector<16x1xf32>
    %124 = vector.broadcast %123 : vector<16x1xf32> to vector<16x32xf32>
    %125 = arith.mulf %120, %124 : vector<16x32xf32>
    %126 = vector.broadcast %9 : vector<1x32xf32> to vector<16x32xf32>
    %127 = arith.mulf %125, %126 : vector<16x32xf32>
    %128 = vector.broadcast %10 : vector<1x32xf32> to vector<16x32xf32>
    %129 = arith.addf %127, %128 : vector<16x32xf32>
    %130 = arith.truncf %129 : vector<16x32xf32> to vector<16x32xbf16>
    %cst_37 = arith.constant dense<0.000000e+00> : vector<16x64xf32>
    %131 = tpu.matmul %130, %18, %cst_37 {dimension_numbers = #tpu.dot_dimension_numbers<[1], [0], [0], [1], [0, 0, 1, 1], [], []>} : vector<16x32xbf16>, vector<32x64xbf16>, vector<16x64xf32> -> vector<16x64xf32>
    %132 = vector.broadcast %11 : vector<1x64xf32> to vector<16x64xf32>
    %133 = arith.addf %131, %132 : vector<16x64xf32>
    %134 = arith.mulf %133, %133 : vector<16x64xf32>
    %135 = arith.mulf %133, %134 : vector<16x64xf32>
    %cst_38 = arith.constant 4.471500e-02 : f32
    %136 = vector.broadcast %cst_38 : f32 to vector<16x64xf32>
    %137 = arith.mulf %136, %135 : vector<16x64xf32>
    %138 = arith.addf %133, %137 : vector<16x64xf32>
    %cst_39 = arith.constant 0.797884583 : f32
    %139 = vector.broadcast %cst_39 : f32 to vector<16x64xf32>
    %140 = arith.mulf %139, %138 : vector<16x64xf32>
    %141 = math.tanh %140 : vector<16x64xf32>
    %cst_40 = arith.constant 1.000000e+00 : f32
    %142 = vector.broadcast %cst_40 : f32 to vector<16x64xf32>
    %143 = arith.addf %142, %141 : vector<16x64xf32>
    %cst_41 = arith.constant 5.000000e-01 : f32
    %144 = vector.broadcast %cst_41 : f32 to vector<16x64xf32>
    %145 = arith.mulf %144, %143 : vector<16x64xf32>
    %146 = arith.mulf %133, %145 : vector<16x64xf32>
    %147 = arith.truncf %146 : vector<16x64xf32> to vector<16x64xbf16>
    %cst_42 = arith.constant dense<0.000000e+00> : vector<16x32xf32>
    %148 = tpu.matmul %147, %21, %cst_42 {dimension_numbers = #tpu.dot_dimension_numbers<[1], [0], [0], [1], [0, 0, 1, 1], [], []>} : vector<16x64xbf16>, vector<64x32xbf16>, vector<16x32xf32> -> vector<16x32xf32>
    %149 = arith.addf %107, %148 : vector<16x32xf32>
    %150 = vector.broadcast %12 : vector<1x32xf32> to vector<16x32xf32>
    %151 = arith.addf %149, %150 : vector<16x32xf32>
    %cst_43 = arith.constant dense<0.000000e+00> : vector<16xf32>
    %152 = vector.multi_reduction <add>, %151, %cst_43 [1] : vector<16x32xf32> to vector<16xf32>
    %153 = vector.shape_cast %152 : vector<16xf32> to vector<16x1xf32>
    %cst_44 = arith.constant 3.200000e+01 : f32
    %154 = vector.broadcast %cst_44 : f32 to vector<16x1xf32>
    %155 = arith.divf %153, %154 : vector<16x1xf32>
    %156 = vector.broadcast %155 : vector<16x1xf32> to vector<16x32xf32>
    %157 = arith.subf %151, %156 : vector<16x32xf32>
    %158 = arith.mulf %157, %157 : vector<16x32xf32>
    %cst_45 = arith.constant dense<0.000000e+00> : vector<16xf32>
    %159 = vector.multi_reduction <add>, %158, %cst_45 [1] : vector<16x32xf32> to vector<16xf32>
    %160 = vector.shape_cast %159 : vector<16xf32> to vector<16x1xf32>
    %cst_46 = arith.constant 3.200000e+01 : f32
    %161 = vector.broadcast %cst_46 : f32 to vector<16x1xf32>
    %162 = arith.divf %160, %161 : vector<16x1xf32>
    %163 = vector.broadcast %155 : vector<16x1xf32> to vector<16x32xf32>
    %164 = arith.subf %151, %163 : vector<16x32xf32>
    %cst_47 = arith.constant 9.99999974E-6 : f32
    %165 = vector.broadcast %cst_47 : f32 to vector<16x1xf32>
    %166 = arith.addf %162, %165 : vector<16x1xf32>
    %167 = math.rsqrt %166 : vector<16x1xf32>
    %168 = vector.broadcast %167 : vector<16x1xf32> to vector<16x32xf32>
    %169 = arith.mulf %164, %168 : vector<16x32xf32>
    %170 = vector.broadcast %13 : vector<1x32xf32> to vector<16x32xf32>
    %171 = arith.mulf %169, %170 : vector<16x32xf32>
    %172 = vector.broadcast %14 : vector<1x32xf32> to vector<16x32xf32>
    %173 = arith.addf %171, %172 : vector<16x32xf32>
    %174 = arith.truncf %173 : vector<16x32xf32> to vector<16x32xbf16>
    %cst_48 = arith.constant dense<0.000000e+00> : vector<16x128xf32>
    %175 = tpu.matmul %174, %19, %cst_48 {dimension_numbers = #tpu.dot_dimension_numbers<[1], [0], [0], [1], [0, 0, 1, 1], [], []>} : vector<16x32xbf16>, vector<32x128xbf16>, vector<16x128xf32> -> vector<16x128xf32>
    %c0_49 = arith.constant 0 : index
    %c0_50 = arith.constant 0 : index
    %176 = vector.load %arg4[%c0_49, %c0_50] : memref<16x128xf32, #tpu.memory_space<vmem>>, vector<16x128xf32>
    tpu.vector_store %arg4[%c0_49, %c0_50], %175 {strides = array<i32>} : memref<16x128xf32, #tpu.memory_space<vmem>>, vector<16x128xf32>,
    return
  }
}

</mosaic_0001>

<bundles_post_ra>
// kernel: tpu_custom_call.1
= control target key start
LH: loop header
LB: loop body
LE: loop exit
PB: predicated region body
PF: predicated region fallthrough
CT: control target
= control target key end

     0   :  { %9 = vsyncpa [#allocation3], 0  ;;  %s1736_s0 = inlined_call_operand.hbm [shape: s32[16,256], index: 0, kind: input, shape index: {}]   ;;  %s1737_s1 = inlined_call_operand.hbm [shape: f32[16,384], index: 1, kind: input, shape index: {}]   ;;  %s1738_s2 = inlined_call_operand.hbm [shape: bf16[32,512], index: 2, kind: input, shape index: {}]   ;;  %s1739_s3 = inlined_call_operand.hbm [shape: bf16[128,256], index: 3, kind: input, shape index: {}]   ;;  %s1740_s4 = inlined_call_operand.hbm [shape: f32[16,128], index: 4, kind: output, shape index: {}]  }
   0x1   :  { %10 = vsyncpa [#allocation6], 0 }
   0x2   :  { %11 = vsyncpa [#allocation9], 0 }
   0x3   :  { %12 = vsyncpa [#allocation4], 0  ;;  %s1522_s15 = smov [#allocation5]  }
   0x4   :  { %s30_s16 = sshll.u32 %s1522_s15, 4  ;;  %s31_s16 = int_to_ptr.vmem [resolvable:$true] %s30_s16 }
   0x5   :  { %s1422_s17 = scalar_lea.vmem %s31_s16, 768  ;;  %p1427_p1 = scmp.lt.s32.totalorder %s31_s16, %s31_s16 }
   0x6   :  { %p1423_p0 = scmp.ne.s32.totalorder %s31_s16, %s1422_s17  ;;  %p1428_p2 = scmp.lt.s32.totalorder %s1422_s17, %s1422_s17 }
   0x8   :  { %p1429_p3 = por %p1428_p2, %p1427_p1 }
   0xa   :  { %p1430_p4 = pnand %p1429_p3, %p1423_p0 }
   0xc   :  { %1433 = shalt.err (!%p1430_p4)
}
   0xd   :  { %s1523_s18 = smov 384   ;;  %s1524_s19 = smov 24  }
   0xe   :  { %36 = dma.hbm_to_vmem [thread:$0]  %s1737_s1, 768, %s31_s16, [#allocation6], %s1523_s18, %s1523_s18, %s1524_s19  }
   0xf   :  { %s1525_s22 = smov [#allocation2]  }
  0x10   :  { %s18_s23 = sshll.u32 %s1525_s22, 4  ;;  %s19_s23 = int_to_ptr.vmem [resolvable:$true] %s18_s23 }
  0x11   :  { %s1442_s24 = scalar_lea.vmem %s19_s23, 512  ;;  %p1447_p6 = scmp.lt.s32.totalorder %s19_s23, %s19_s23 }
  0x12   :  { %p1443_p5 = scmp.ne.s32.totalorder %s19_s23, %s1442_s24  ;;  %p1448_p7 = scmp.lt.s32.totalorder %s1442_s24, %s1442_s24 }
  0x14   :  { %p1449_p8 = por %p1448_p7, %p1447_p6 }
  0x16   :  { %p1450_p9 = pnand %p1449_p8, %p1443_p5 }
  0x18   :  { %1453 = shalt.err (!%p1450_p9)
}
  0x19   :  { %s1526_s25 = smov 256   ;;  %s1527_s26 = smov 16  }
  0x1a   :  { %24 = dma.hbm_to_vmem [thread:$0]  %s1736_s0, 512, %s19_s23, [#allocation3], %s1526_s25, %s1526_s25, %s1527_s26  }
  0x1b   :  { %s1528_s29 = smov [#allocation7]   ;;  %s1529_s5 = smov [#allocation8]  }
  0x1c   :  { %s42_s30 = sshll.u32 %s1528_s29, 4  ;;  %s54_s1 = sshll.u32 %s1529_s5, 4  ;;  %s43_s30 = int_to_ptr.vmem [resolvable:$true] %s42_s30  ;;  %s55_s1 = int_to_ptr.vmem [resolvable:$true] %s54_s1 }
  0x1d   :  { %s1462_s6 = scalar_lea.vmem %s43_s30, 1024  ;;  %p1467_p11 = scmp.lt.s32.totalorder %s43_s30, %s43_s30 }
  0x1e   :  { %p1463_p10 = scmp.ne.s32.totalorder %s43_s30, %s1462_s6  ;;  %p1468_p12 = scmp.lt.s32.totalorder %s1462_s6, %s1462_s6 }
  0x20   :  { %p1469_p13 = por %p1468_p12, %p1467_p11 }
  0x22   :  { %p1470_p0 = pnand %p1469_p13, %p1463_p10 }
  0x24   :  { %1473 = shalt.err (!%p1470_p0)
}
  0x25   :  { %48 = dma.hbm_to_vmem [thread:$0]  %s1738_s2, 1024, %s43_s30, [#allocation6], %s1526_s25, %s1526_s25, %s1527_s26  }
  0x26   :  { %s1482_s9 = scalar_lea.vmem %s55_s1, 2048  ;;  %p1487_p2 = scmp.lt.s32.totalorder %s55_s1, %s55_s1 }
  0x27   :  { %p1483_p1 = scmp.ne.s32.totalorder %s55_s1, %s1482_s9  ;;  %p1488_p3 = scmp.lt.s32.totalorder %s1482_s9, %s1482_s9 }
  0x29   :  { %p1489_p4 = por %p1488_p3, %p1487_p2 }
  0x2b   :  { %p1490_p5 = pnand %p1489_p4, %p1483_p1 }
  0x2d   :  { %1493 = shalt.err (!%p1490_p5)
}
  0x2e   :  { %s1530_s0 = smov 128   ;;  %s1531_s10 = smov 8  }
  0x2f   :  { %60 = dma.hbm_to_vmem [thread:$0]  %s1739_s3, 2048, %s55_s1, [#allocation9], %s1530_s0, %s1530_s0, %s1531_s10  }
  0x30   :  { %1514 = dma.done.wait [#allocation3], 512  }
  0x31   :  { %1515 = vsyncadd [#allocation3], 4294966784 }
  0x32   :  { %1516 = dma.done.wait [#allocation6], 1792  }
  0x33   :  { %1517 = vsyncadd [#allocation6], 4294965504 }
  0x34   :  { %1518 = dma.done.wait [#allocation9], 2048  }
  0x35   :  { %1519 = vsyncadd [#allocation9], 4294965248  ;;  %v1532_v0 = vmov 0   ;;  %v1533_v1 = vmov 0.0   ;;  %v74_v2 = vld [vmem:[#allocation2] sm:$0xff]  ;;  %v76_v4 = vld [vmem:[#allocation2 + $0x10] sm:$0xff]  ;;  %v124_v12 = vlaneseq }
  0x36   :  { %1361 = vset.pattern.permute.xlu0 %v1532_v0  ;;  %1245 = vmatprep.subr.bf16.mxu0 %v1533_v1  ;;  %v1362_v3 = vld [vmem:[#allocation8 + $0x70] ss:$8 sps:$4 sm:$0xff]   ;;  %v1363_v5 = vld [vmem:[#allocation8 + $0x60] ss:$8 sps:$4 sm:$0xff]   ;;  %vm1534_vm0 = vmmov 0   ;;  %vm230_vm4 = vcmask 261120  }
  0x37   :  { %1265 = vmatprep.subr.bf16.mxu1 %v1533_v1  ;;  %127 = vperm.xlu0 %1361, %v74_v2   ;;  %v1364_v6 = vld [vmem:[#allocation8 + $0x50] ss:$8 sps:$4 sm:$0xff]   ;;  %v1365_v7 = vld [vmem:[#allocation8 + $0x40] ss:$8 sps:$4 sm:$0xff]   ;;  %v125_v14 = vand.u32 127, %v124_v12  ;;  %v1611_v46 = vshrl.u32 %v124_v12, 7 }
  0x38   :  { %1246 = vmatpush3.bf16.msra.mxu0 %v1362_v3  ;;  %1261 = vmatprep.mubr.msk.bf16.mxu0 %vm1534_vm0, %v1533_v1  ;;  %v1366_v8 = vld [vmem:[#allocation8 + $0x30] ss:$8 sps:$4 sm:$0xff]   ;;  %v1367_v9 = vld [vmem:[#allocation8 + $0x20] ss:$8 sps:$4 sm:$0xff]   ;;  %v1535_v16 = vmov 1.0|1.0  }
  0x39   :  { %1247 = vmatprep.subr.bf16.mxu0 %v1533_v1  ;;  %1269 = vmatprep.mubr.msk.bf16.mxu1 %vm1534_vm0, %v1533_v1  ;;  %v1368_v10 = vld [vmem:[#allocation8 + $0x10] ss:$8 sps:$4 sm:$0xff]   ;;  %v1369_v11 = vld [vmem:[#allocation8] ss:$8 sps:$4 sm:$0xff]   ;;  %v122_v17 = vld [vmem:[#allocation8 + $0x44] ss:$8 sps:$4 sm:$0xff]  }
  0x3a   :  { %v139_v18 = vunpack.c.l.bf16 %v122_v17  ;;  %v140_v21 = vunpack.c.h.bf16 %v122_v17  ;;  %v1370_v38 = vld [vmem:[#allocation7 + $0x20] ss:$16 sps:$4 sm:$0xff]   ;;  %v1614_v47 = vsub.s32 0, %v1611_v46  ;;  %v266_v52 = vsub.s32 1, %v1611_v46  ;;  %s1536_s2 = smov 96   ;;  %s1537_s3 = smov 64  }
  0x3b   :  { %130 = vperm.xlu0 %1361, %v76_v4   ;;  %1266 = vmatpush3.bf16.msra.mxu1 %v1370_v38  ;;  %v1371_v39 = vld [vmem:[#allocation7] ss:$16 sps:$4 sm:$0xff]   ;;  %v273_v61 = vsub.s32 2, %v1611_v46  ;;  %vm345_vm5 = vcmask 130048   ;;  %s1538_s13 = smov 80   ;;  %s1539_s14 = smov 112  }
  0x3c   :  { %1248 = vmatpush3.bf16.msra.mxu0 %v1363_v5  ;;  %1267 = vmatprep.subr.bf16.mxu1 %v1533_v1  ;;  %v1616_v48 = vld [vmem:[#allocation5] sm:$0xff]  ;;  %s1540_s15 = smov 48   ;;  %vm990_vm6 = vcmask 523264   ;;  %s1541_s16 = smov [#allocation10]  }
  0x3d   :  { %1249 = vmatprep.subr.bf16.mxu0 %v1533_v1  ;;  %v261_v51 = vrot.slane %v1616_v48, %v1614_v47  ;;  %v267_v56 = vrot.slane %v1616_v48, %v266_v52  ;;  %v274_v62 = vrot.slane %v1616_v48, %v273_v61  ;;  %v80_v12 = vld [vmem:[#allocation5 + $0x20] sm:$0xff]  ;;  %s1145_s17 = sshll.u32 %s1541_s16, 4  ;;  %s1146_s17 = int_to_ptr.vmem [resolvable:$true] %s1145_s17 }
  0x3e   :  { %s1494_s18 = scalar_lea.vmem %s1146_s17, 256  ;;  %p1499_p7 = scmp.lt.s32.totalorder %s1146_s17, %s1146_s17 }
  0x3f   :  { %1268 = vmatpush3.bf16.msra.mxu1 %v1371_v39  ;;  %p1495_p6 = scmp.ne.s32.totalorder %s1146_s17, %s1494_s18  ;;  %p1500_p8 = scmp.lt.s32.totalorder %s1494_s18, %s1494_s18 }
  0x40   :  { %1250 = vmatpush3.bf16.msra.mxu0 %v1364_v6 }
  0x41   :  { %1251 = vmatprep.subr.bf16.mxu0 %v1533_v1  ;;  %p1501_p9 = por %p1500_p8, %p1499_p7 }
  0x43   :  { %p1502_p10 = pnand %p1501_p9, %p1495_p6 }
  0x44   :  { %1252 = vmatpush3.bf16.msra.mxu0 %v1365_v7 }
  0x45   :  { %1253 = vmatprep.subr.bf16.mxu0 %v1533_v1 }
  0x48   :  { %1254 = vmatpush3.bf16.msra.mxu0 %v1366_v8  ;;  %v75_v8 = vld [vmem:[#allocation2 + $0x8] sm:$0xff] }
  0x49   :  { %1255 = vmatprep.subr.bf16.mxu0 %v1533_v1 }
  0x4c   :  { %1256 = vmatpush3.bf16.msra.mxu0 %v1367_v9  ;;  %v1174_v9 = vadd.f32 -1.0, %v75_v8 }
  0x4d   :  { %1257 = vmatprep.subr.bf16.mxu0 %v1533_v1 }
  0x50   :  { %1258 = vmatpush3.bf16.msra.mxu0 %v1368_v10  ;;  %v332_v10 = vmul.f32 1e+09, %v1174_v9 }
  0x51   :  { %1259 = vmatprep.subr.bf16.mxu0 %v1533_v1 }
  0x54   :  { %1260 = vmatpush3.bf16.msra.mxu0 %v1369_v11  ;;  %v336_v11 = vrot.slane %v332_v10, %v1614_v47 }
  0x55   :  { %1307 = vmatprep.subr.bf16.mxu0 %v1533_v1 }
  0xb2   :  { %v128_v13 = vpop.permute.xlu0 %127 }
  0xb3   :  { %vm132_vm1 = vcmp.eq.s32.totalorder %v125_v14, %v128_v13  ;;  %v78_v13 = vld [vmem:[#allocation5 + $0x8] sm:$0xff] }
  0xb6   :  { %v131_v15 = vpop.permute.xlu0 %130 }
  0xb7   :  { %vm133_vm2 = vcmp.eq.s32.totalorder %v125_v14, %v131_v15  ;;  %v1642_v14 = vadd.f32 %v336_v11, %v80_v12  ;;  %v1644_v15 = vadd.f32 %v336_v11, %v78_v13 }
  0xb8   :  { %vm1169_vm3 = vmpackc.low %vm133_vm2, %vm132_vm1 }
  0xb9   :  { %1262 = vmatmul.mubr.msk.bf16.vlgmr.msra.gmra.mxu0 %vm1169_vm3, %v1535_v16 }
  0xba   :  { %1309 = vmatprep.mubr.msk.bf16.mxu0 %vm1534_vm0, %v1533_v1 }
 0x179   :  { %v223_v19 = vpop.f32.mrf.mxu0 }
 0x17a   :  { %v1598_v20 = vadd.f32 %v223_v19, %v139_v18 }
 0x17b   :  { %v1263_v22 = vpop.f32.mrf.mxu0 }
 0x17c   :  { %v231_v23 = vsel %vm230_vm4, %v1598_v20, 0.0 }
 0x17d   :  { %232 = vadd.xlane.f32.xlu1 %v231_v23  ;;  %v226_v24 = vpop.f32.mrf.mxu0 }
 0x17e   :  { %v1602_v25 = vadd.f32 %v226_v24, %v140_v21 }
 0x17f   :  { %v1264_v26 = vpop.f32.mrf.mxu0 }
 0x180   :  { %v234_v27 = vsel %vm230_vm4, %v1602_v25, 0.0 }
 0x181   :  { %235 = vadd.xlane.f32.xlu1 %v234_v27 }
 0x206   :  { %v233_v28 = vpop.xlane.xlu1 %232 }
 0x207   :  { %v238_v29 = vmul.f32 0.03125, %v233_v28 }
 0x209   :  { %v240_v30 = vsub.f32 %v1598_v20, %v238_v29 }
 0x20a   :  { %v236_v31 = vpop.xlane.xlu1 %235 }
 0x20b   :  { %v239_v32 = vmul.f32 0.03125, %v236_v31  ;;  %v242_v33 = vmul.f32 %v240_v30, %v240_v30 }
 0x20d   :  { %v241_v34 = vsub.f32 %v1602_v25, %v239_v32  ;;  %v244_v35 = vsel %vm230_vm4, %v242_v33, 0.0 }
 0x20e   :  { %245 = vadd.xlane.f32.xlu0 %v244_v35 }
 0x20f   :  { %v243_v36 = vmul.f32 %v241_v34, %v241_v34 }
 0x211   :  { %v247_v37 = vsel %vm230_vm4, %v243_v36, 0.0 }
 0x212   :  { %248 = vadd.xlane.f32.xlu1 %v247_v37 }
 0x297   :  { %v246_v40 = vpop.xlane.xlu0 %245 }
 0x298   :  { %v250_v41 = vmul.f32 0.03125, %v246_v40 }
 0x29a   :  { %v252_v42 = vadd.f32 1e-05, %v250_v41 }
 0x29b   :  { %v249_v43 = vpop.xlane.xlu1 %248 }
 0x29c   :  { %1382 = vrsqrt.f32 %v252_v42  ;;  %v251_v44 = vmul.f32 0.03125, %v249_v43 }
 0x29e   :  { %v253_v45 = vadd.f32 1e-05, %v251_v44 }
 0x2a0   :  { %1384 = vrsqrt.f32 %v253_v45 }
 0x2a9   :  { %v1383_v49 = vpop.eup %1382 }
 0x2aa   :  { %v256_v50 = vmul.f32 %v1383_v49, %v240_v30  ;;  %v1372_v49 = vld [vmem:[#allocation7 + $0x4] ss:$16 sps:$4 sm:$0xff]  }
 0x2ab   :  { %1308 = vmatpush3.bf16.msra.mxu0 %v1372_v49 }
 0x2ac   :  { %v262_v55 = vmul.f32 %v261_v51, %v256_v50  ;;  %1321 = vmatprep.subr.bf16.mxu0 %v1533_v1 }
 0x2ad   :  { %v1385_v53 = vpop.eup %1384 }
 0x2ae   :  { %v257_v54 = vmul.f32 %v1385_v53, %v241_v34  ;;  %v268_v58 = vadd.f32 %v267_v56, %v262_v55 }
 0x2b0   :  { %v263_v57 = vmul.f32 %v261_v51, %v257_v54 }
 0x2b2   :  { %v269_v59 = vadd.f32 %v267_v56, %v263_v57 }
 0x2b4   :  { %v270_v60 = vpack.c.bf16 %v269_v59, %v268_v58 }
 0x2b6   :  { %1270 = vmatmul.mubr.msk.bf16.vlgmr.msra.gmra.mxu1 %vm230_vm4, %v270_v60 }
 0x376   :  { %v324_v63 = vpop.f32.mrf.mxu1 }
 0x377   :  { %v1627_v0 = vadd.f32 %v324_v63, %v274_v62 }
 0x378   :  { %v1271_v2 = vpop.f32.mrf.mxu1 }
 0x379   :  { %1277 = vmatprep.mubr.msk.f32.mxu1 %vm345_vm5, %v1627_v0 }
 0x37a   :  { %v327_v3 = vpop.f32.mrf.mxu1 }
 0x37b   :  { %v1631_v4 = vadd.f32 %v327_v3, %v274_v62 }
 0x37c   :  { %v1272_v5 = vpop.f32.mrf.mxu1 }
 0x37d   :  { %343 = vrot.lane.b32.xlu1 %v1631_v4, %s1536_s2 }
 0x381   :  { %341 = vrot.lane.b32.xlu1 %v1627_v0, %s1536_s2 }
 0x3ef   :  { %v344_v6 = vpop.permute.xlu1 %343 }
 0x3f0   :  { %1273 = vmatprep.subr.msk.mxu1 %vm345_vm5, %v344_v6 }
 0x3f1   :  { %1274 = vmatpush3.xpose.msk.msra.mxu1 %vm345_vm5, %v344_v6 }
 0x3f3   :  { %v342_v7 = vpop.permute.xlu1 %341 }
 0x3f4   :  { %1275 = vmatprep.subr.msk.mxu1 %vm345_vm5, %v342_v7 }
 0x3f5   :  { %1276 = vmatpush3.xpose.msk.msra.mxu1 %vm345_vm5, %v342_v7 }
 0x3f8   :  { %1278 = vmatmul.mubr.msk.f32.vlgmr.msra.gmra.mxu1 %vm345_vm5, %v1631_v4 }
 0x4b8   :  { %v1279_v16 = vpop.f32.mrf.mxu1 }
 0x4b9   :  { %v426_v17 = vadd.f32 %v1279_v16, %v1642_v14 }
 0x4ba   :  { %v420_v18 = vpop.f32.mrf.mxu1 }
 0x4bb   :  { %v421_v19 = vadd.f32 %v420_v18, %v1644_v15  ;;  %v432_v21 = vsel %vm345_vm5, %v426_v17, -inf }
 0x4bc   :  { %433 = vmax.xlane.f32.xlu0 %v432_v21 }
 0x4bd   :  { %v429_v22 = vsel %vm345_vm5, %v421_v19, -inf }
 0x4be   :  { %430 = vmax.xlane.f32.xlu1 %v429_v22 }
 0x4cf   :  { %451 = vrot.lane.b32.xlu1 %v1627_v0, %s1537_s3 }
 0x4d2   :  { %453 = vrot.lane.b32.xlu0 %v1631_v4, %s1537_s3 }
 0x4d6   :  { %545 = vrot.lane.b32.xlu0 %v1631_v4, %s1538_s13 }
 0x545   :  { %v434_v23 = vpop.xlane.xlu0 %433 }
 0x546   :  { %v436_v24 = vsub.f32 %v426_v17, %v434_v23 }
 0x547   :  { %v431_v26 = vpop.xlane.xlu1 %430 }
 0x548   :  { %v439_v27 = vmul.f32 1.442695, %v436_v24  ;;  %v435_v28 = vsub.f32 %v421_v19, %v431_v26  ;;  %v1373_v19 = vld [vmem:[#allocation7 + $0x24] ss:$16 sps:$4 sm:$0xff]   ;;  %v844_v24 = vsub.s32 3, %v1611_v46 }
 0x549   :  { %v454_v29 = vpop.permute.xlu0 %453 }
 0x54a   :  { %1386 = vpow2.f32 %v439_v27  ;;  %v437_v30 = vmul.f32 1.442695, %v435_v28  ;;  %1280 = vmatprep.subr.mxu1 %v454_v29  ;;  %v845_v28 = vrot.slane %v1616_v48, %v844_v24 }
 0x54b   :  { %1281 = vmatpush3.msra.mxu1 %v454_v29  ;;  %v452_v31 = vpop.permute.xlu1 %451 }
 0x54c   :  { %1388 = vpow2.f32 %v437_v30  ;;  %1282 = vmatprep.subr.mxu1 %v452_v31 }
 0x54d   :  { %v546_v32 = vpop.permute.xlu0 %545  ;;  %1283 = vmatpush3.msra.mxu1 %v452_v31 }
 0x54e   :  { %1287 = vmatprep.subr.msk.mxu1 %vm345_vm5, %v546_v32 }
 0x557   :  { %v1387_v33 = vpop.eup %1386 }
 0x558   :  { %v444_v34 = vsel %vm345_vm5, %v1387_v33, 0.0 }
 0x559   :  { %v1389_v35 = vpop.eup %1388  ;;  %445 = vadd.xlane.f32.xlu0 %v444_v34 }
 0x55a   :  { %v441_v36 = vsel %vm345_vm5, %v1389_v35, 0.0 }
 0x55d   :  { %442 = vadd.xlane.f32.xlu0 %v441_v36 }
 0x573   :  { %543 = vrot.lane.b32.xlu0 %v1627_v0, %s1538_s13 }
 0x577   :  { %539 = vrot.lane.b32.xlu0 %v1627_v0, %s1539_s14 }
 0x57b   :  { %541 = vrot.lane.b32.xlu0 %v1631_v4, %s1539_s14 }
 0x5e2   :  { %v446_v37 = vpop.xlane.xlu0 %445 }
 0x5e3   :  { %1390 = vrcp.f32 %v446_v37 }
 0x5e6   :  { %v443_v38 = vpop.xlane.xlu0 %442 }
 0x5e7   :  { %1392 = vrcp.f32 %v443_v38 }
 0x5ea   :  { %v544_v39 = vpop.permute.xlu0 %543 }
 0x5ee   :  { %v540_v44 = vpop.permute.xlu0 %539 }
 0x5f0   :  { %v1391_v40 = vpop.eup %1390 }
 0x5f1   :  { %v450_v43 = vmul.f32 %v1391_v40, %v1387_v33 }
 0x5f2   :  { %v542_v45 = vpop.permute.xlu0 %541 }
 0x5f4   :  { %v1393_v41 = vpop.eup %1392 }
 0x5f5   :  { %v449_v42 = vmul.f32 %v1393_v41, %v1389_v35 }
 0x5f7   :  { %1284 = vmatprep.mubr.msk.f32.mxu1 %vm345_vm5, %v449_v42 }
 0x5f8   :  { %1285 = vmatmul.mubr.msk.f32.vlgmr.msra.gmra.mxu1 %vm345_vm5, %v450_v43 }
 0x5f9   :  { %1288 = vmatpush3.xpose.msk.msra.mxu1 %vm345_vm5, %v546_v32  ;;  %1291 = vmatprep.mubr.msk.f32.mxu1 %vm345_vm5, %v540_v44 }
 0x5fa   :  { %1289 = vmatprep.subr.msk.mxu1 %vm345_vm5, %v544_v39 }
 0x5fd   :  { %1290 = vmatpush3.xpose.msk.msra.mxu1 %vm345_vm5, %v544_v39 }
 0x600   :  { %1292 = vmatmul.mubr.msk.f32.vlgmr.msra.gmra.mxu1 %vm345_vm5, %v542_v45 }
 0x6b8   :  { %v1286_v50 = vpop.f32.mrf.mxu1 }
 0x6ba   :  { %v529_v51 = vpop.f32.mrf.mxu1 }
 0x6bb   :  { %v538_v53 = vpack.c.bf16 %v1286_v50, %v529_v51  ;;  %v1374_v50 = vld [vmem:[#allocation7 + $0x28] ss:$16 sps:$4 sm:$0xff]  }
 0x6bc   :  { %v1375_v51 = vld [vmem:[#allocation7 + $0x8] ss:$16 sps:$4 sm:$0xff]  }
 0x6bd   :  { %1310 = vmatmul.mubr.msk.bf16.vlgmr.msra.gmra.mxu0 %vm345_vm5, %v538_v53 }
 0x6be   :  { %1329 = vmatprep.mubr.msk.bf16.mxu0 %vm1534_vm0, %v1533_v1 }
 0x6c0   :  { %v1293_v54 = vpop.f32.mrf.mxu1 }
 0x6c1   :  { %v627_v55 = vadd.f32 %v1293_v54, %v1642_v14 }
 0x6c2   :  { %v621_v56 = vpop.f32.mrf.mxu1 }
 0x6c3   :  { %v622_v57 = vadd.f32 %v621_v56, %v1644_v15  ;;  %v633_v58 = vsel %vm345_vm5, %v627_v55, -inf }
 0x6c4   :  { %634 = vmax.xlane.f32.xlu0 %v633_v58 }
 0x6c5   :  { %v630_v59 = vsel %vm345_vm5, %v622_v57, -inf }
 0x6c6   :  { %631 = vmax.xlane.f32.xlu1 %v630_v59  ;;  %v876_v59 = vsub.s32 4, %v1611_v46 }
 0x74d   :  { %v635_v60 = vpop.xlane.xlu0 %634 }
 0x74e   :  { %v637_v61 = vsub.f32 %v627_v55, %v635_v60 }
 0x74f   :  { %v632_v62 = vpop.xlane.xlu1 %631 }
 0x750   :  { %v640_v63 = vmul.f32 1.442695, %v637_v61  ;;  %v636_v2 = vsub.f32 %v622_v57, %v632_v62  ;;  %v877_v62 = vrot.slane %v1616_v48, %v876_v59 }
 0x752   :  { %1394 = vpow2.f32 %v640_v63  ;;  %v638_v3 = vmul.f32 1.442695, %v636_v2  ;;  %v882_v63 = vsub.s32 5, %v1611_v46 }
 0x754   :  { %1396 = vpow2.f32 %v638_v3 }
 0x75f   :  { %v1395_v5 = vpop.eup %1394 }
 0x760   :  { %v645_v6 = vsel %vm345_vm5, %v1395_v5, 0.0 }
 0x761   :  { %v1397_v7 = vpop.eup %1396  ;;  %646 = vadd.xlane.f32.xlu1 %v645_v6  ;;  %v883_v6 = vrot.slane %v1616_v48, %v882_v63 }
 0x762   :  { %v642_v8 = vsel %vm345_vm5, %v1397_v7, 0.0 }
 0x763   :  { %643 = vadd.xlane.f32.xlu0 %v642_v8 }
 0x772   :  { %652 = vrot.lane.b32.xlu1 %v1627_v0, %s1540_s15 }
 0x779   :  { %654 = vrot.lane.b32.xlu0 %v1631_v4, %s1540_s15 }
 0x77d   :  { %v833_v9 = vpop.f32.mrf.mxu0 }
 0x77f   :  { %v1311_v10 = vpop.f32.mrf.mxu0 }
 0x781   :  { %v836_v11 = vpop.f32.mrf.mxu0 }
 0x783   :  { %v1312_v12 = vpop.f32.mrf.mxu0 }
 0x784   :  { %v1377_v12 = vld [vmem:[#allocation8 + $0x24] ss:$8 sps:$4 sm:$0xff]  }
 0x7ea   :  { %v647_v13 = vpop.xlane.xlu1 %646 }
 0x7eb   :  { %1398 = vrcp.f32 %v647_v13  ;;  %v1378_v13 = vld [vmem:[#allocation8 + $0x14] ss:$8 sps:$4 sm:$0xff]  }
 0x7ec   :  { %v644_v14 = vpop.xlane.xlu0 %643 }
 0x7ed   :  { %1400 = vrcp.f32 %v644_v14  ;;  %v1379_v14 = vld [vmem:[#allocation8 + $0x4] ss:$8 sps:$4 sm:$0xff]  }
 0x7ee   :  { %v653_v16 = vpop.permute.xlu1 %652 }
 0x7f0   :  { %v655_v15 = vpop.permute.xlu0 %654 }
 0x7f1   :  { %1294 = vmatprep.subr.mxu1 %v655_v15 }
 0x7f2   :  { %1295 = vmatpush3.msra.mxu1 %v655_v15  ;;  %v889_v15 = vsub.s32 6, %v1611_v46 }
 0x7f3   :  { %1296 = vmatprep.subr.mxu1 %v653_v16 }
 0x7f4   :  { %1297 = vmatpush3.msra.mxu1 %v653_v16  ;;  %v890_v16 = vrot.slane %v1616_v48, %v889_v15 }
 0x7f5   :  { %1301 = vmatprep.subr.bf16.mxu1 %v1533_v1 }
 0x7f8   :  { %v1399_v17 = vpop.eup %1398 }
 0x7f9   :  { %v651_v4 = vmul.f32 %v1399_v17, %v1395_v5 }
 0x7fa   :  { %v1401_v0 = vpop.eup %1400 }
 0x7fb   :  { %v650_v18 = vmul.f32 %v1401_v0, %v1397_v7 }
 0x7fd   :  { %1298 = vmatprep.mubr.msk.f32.mxu1 %vm345_vm5, %v650_v18 }
 0x7fe   :  { %1299 = vmatmul.mubr.msk.f32.vlgmr.msra.gmra.mxu1 %vm345_vm5, %v651_v4 }
 0x7ff   :  { %1303 = vmatprep.mubr.msk.bf16.mxu1 %vm1534_vm0, %v1533_v1  ;;  %1302 = vmatpush3.bf16.msra.mxu1 %v1373_v19 }
 0x800   :  { %1313 = vmatprep.subr.bf16.mxu1 %v1533_v1 }
 0x8be   :  { %v1300_v21 = vpop.f32.mrf.mxu1 }
 0x8c0   :  { %v730_v22 = vpop.f32.mrf.mxu1 }
 0x8c1   :  { %v739_v23 = vpack.c.bf16 %v1300_v21, %v730_v22 }
 0x8c3   :  { %1304 = vmatmul.mubr.msk.bf16.vlgmr.msra.gmra.mxu1 %vm345_vm5, %v739_v23 }
 0x8c4   :  { %1317 = vmatprep.mubr.msk.bf16.mxu1 %vm1534_vm0, %v1533_v1  ;;  %1314 = vmatpush3.bf16.msra.mxu1 %v1374_v50 }
 0x8c5   :  { %1315 = vmatprep.subr.bf16.mxu1 %v1533_v1 }
 0x8c8   :  { %1316 = vmatpush3.bf16.msra.mxu1 %v1375_v51 }
 0x8c9   :  { %1333 = vmatprep.subr.bf16.mxu1 %v1533_v1 }
 0x983   :  { %v783_v26 = vpop.f32.mrf.mxu1 }
 0x984   :  { %v834_v27 = vadd.f32 %v833_v9, %v783_v26 }
 0x985   :  { %v1305_v29 = vpop.f32.mrf.mxu1 }
 0x986   :  { %v840_v30 = vadd.f32 %v834_v27, %v1598_v20 }
 0x987   :  { %v786_v31 = vpop.f32.mrf.mxu1 }
 0x988   :  { %v1690_v32 = vadd.f32 %v845_v28, %v840_v30  ;;  %v837_v33 = vadd.f32 %v836_v11, %v786_v31  ;;  %v1376_v11 = vld [vmem:[#allocation8 + $0x34] ss:$8 sps:$4 sm:$0xff]  }
 0x989   :  { %v1306_v34 = vpop.f32.mrf.mxu1  ;;  %1322 = vmatpush3.bf16.msra.mxu0 %v1376_v11 }
 0x98a   :  { %v841_v35 = vadd.f32 %v837_v33, %v1602_v25  ;;  %v848_v36 = vsel %vm230_vm4, %v1690_v32, 0.0  ;;  %1323 = vmatprep.subr.bf16.mxu0 %v1533_v1 }
 0x98b   :  { %849 = vadd.xlane.f32.xlu1 %v848_v36 }
 0x98c   :  { %v1695_v37 = vadd.f32 %v845_v28, %v841_v35 }
 0x98d   :  { %1324 = vmatpush3.bf16.msra.mxu0 %v1377_v12  ;;  %v79_v12 = vld [vmem:[#allocation5 + $0x18] sm:$0xff] }
 0x98e   :  { %v851_v38 = vsel %vm230_vm4, %v1695_v37, 0.0  ;;  %1325 = vmatprep.subr.bf16.mxu0 %v1533_v1 }
 0x98f   :  { %852 = vadd.xlane.f32.xlu0 %v851_v38 }
 0x991   :  { %1326 = vmatpush3.bf16.msra.mxu0 %v1378_v13 }
 0x992   :  { %1327 = vmatprep.subr.bf16.mxu0 %v1533_v1 }
 0x995   :  { %1328 = vmatpush3.bf16.msra.mxu0 %v1379_v14  ;;  %v1072_v14 = vrot.slane %v79_v12, %v1614_v47 }
 0xa14   :  { %v850_v39 = vpop.xlane.xlu1 %849 }
 0xa15   :  { %v854_v40 = vmul.f32 0.03125, %v850_v39 }
 0xa17   :  { %v856_v20 = vsub.f32 %v1690_v32, %v854_v40 }
 0xa18   :  { %v853_v41 = vpop.xlane.xlu0 %852 }
 0xa19   :  { %v855_v42 = vmul.f32 0.03125, %v853_v41  ;;  %v858_v43 = vmul.f32 %v856_v20, %v856_v20 }
 0xa1b   :  { %v857_v44 = vsub.f32 %v1695_v37, %v855_v42  ;;  %v860_v25 = vsel %vm230_vm4, %v858_v43, 0.0  ;;  %v1039_v43 = vsub.s32 7, %v1611_v46 }
 0xa1c   :  { %861 = vadd.xlane.f32.xlu0 %v860_v25 }
 0xa1d   :  { %v859_v45 = vmul.f32 %v857_v44, %v857_v44 }
 0xa1f   :  { %v863_v49 = vsel %vm230_vm4, %v859_v45, 0.0 }
 0xa20   :  { %864 = vadd.xlane.f32.xlu1 %v863_v49 }
 0xaa5   :  { %v862_v53 = vpop.xlane.xlu0 %861 }
 0xaa6   :  { %v866_v54 = vmul.f32 0.03125, %v862_v53 }
 0xaa8   :  { %v868_v55 = vadd.f32 1e-05, %v866_v54 }
 0xaa9   :  { %v865_v56 = vpop.xlane.xlu1 %864 }
 0xaaa   :  { %1402 = vrsqrt.f32 %v868_v55  ;;  %v867_v57 = vmul.f32 0.03125, %v865_v56 }
 0xaac   :  { %v869_v58 = vadd.f32 1e-05, %v867_v57 }
 0xaae   :  { %1404 = vrsqrt.f32 %v869_v58 }
 0xab7   :  { %v1403_v60 = vpop.eup %1402 }
 0xab8   :  { %v872_v61 = vmul.f32 %v1403_v60, %v856_v20 }
 0xaba   :  { %v878_v5 = vmul.f32 %v877_v62, %v872_v61 }
 0xabb   :  { %v1405_v2 = vpop.eup %1404 }
 0xabc   :  { %v873_v3 = vmul.f32 %v1405_v2, %v857_v44  ;;  %v884_v8 = vadd.f32 %v883_v6, %v878_v5  ;;  %v1040_v44 = vrot.slane %v1616_v48, %v1039_v43  ;;  %v1381_v5 = vld [vmem:[#allocation7 + $0xc] ss:$16 sps:$4 sm:$0xff]  }
 0xabe   :  { %v879_v7 = vmul.f32 %v877_v62, %v873_v3  ;;  %v1380_v3 = vld [vmem:[#allocation7 + $0x2c] ss:$16 sps:$4 sm:$0xff]  }
 0xac0   :  { %v885_v9 = vadd.f32 %v883_v6, %v879_v7 }
 0xac2   :  { %v886_v10 = vpack.c.bf16 %v885_v9, %v884_v8 }
 0xac4   :  { %1318 = vmatmul.mubr.msk.bf16.vlgmr.msra.gmra.mxu1 %vm230_vm4, %v886_v10 }
 0xac5   :  { %1337 = vmatprep.mubr.msk.bf16.mxu1 %vm1534_vm0, %v1533_v1  ;;  %1334 = vmatpush3.bf16.msra.mxu1 %v1380_v3 }
 0xac6   :  { %1335 = vmatprep.subr.bf16.mxu1 %v1533_v1 }
 0xac9   :  { %1336 = vmatpush3.bf16.msra.mxu1 %v1381_v5 }
 0xb84   :  { %v940_v17 = vpop.f32.mrf.mxu1 }
 0xb85   :  { %v941_v0 = vadd.f32 %v940_v17, %v890_v16  ;;  %v1078_v17 = vrot.slane %v79_v12, %v266_v52 }
 0xb86   :  { %v1319_v18 = vpop.f32.mrf.mxu1 }
 0xb87   :  { %v947_v4 = vmul.f32 %v941_v0, %v941_v0 }
 0xb88   :  { %v943_v19 = vpop.f32.mrf.mxu1 }
 0xb89   :  { %v949_v21 = vmul.f32 %v947_v4, %v941_v0  ;;  %v944_v22 = vadd.f32 %v943_v19, %v890_v16 }
 0xb8a   :  { %v1320_v23 = vpop.f32.mrf.mxu1 }
 0xb8b   :  { %v951_v24 = vmul.f32 0.044715, %v949_v21  ;;  %v948_v26 = vmul.f32 %v944_v22, %v944_v22 }
 0xb8d   :  { %v953_v27 = vadd.f32 %v951_v24, %v941_v0  ;;  %v950_v28 = vmul.f32 %v948_v26, %v944_v22 }
 0xb8f   :  { %v955_v29 = vmul.f32 0.7978846, %v953_v27  ;;  %v952_v30 = vmul.f32 0.044715, %v950_v28 }
 0xb91   :  { %1406 = vtanh.f32 %v955_v29  ;;  %v954_v31 = vadd.f32 %v952_v30, %v944_v22 }
 0xb93   :  { %v956_v33 = vmul.f32 0.7978846, %v954_v31 }
 0xb95   :  { %1408 = vtanh.f32 %v956_v33 }
 0xb9e   :  { %v1407_v34 = vpop.eup %1406 }
 0xb9f   :  { %v959_v35 = vadd.f32 1.0, %v1407_v34 }
 0xba1   :  { %v961_v38 = vmul.f32 0.5, %v959_v35 }
 0xba2   :  { %v1409_v36 = vpop.eup %1408 }
 0xba3   :  { %v960_v39 = vadd.f32 1.0, %v1409_v36  ;;  %v963_v20 = vmul.f32 %v961_v38, %v941_v0 }
 0xba5   :  { %v962_v40 = vmul.f32 0.5, %v960_v39 }
 0xba7   :  { %v964_v41 = vmul.f32 %v962_v40, %v944_v22 }
 0xba9   :  { %v965_v42 = vpack.c.bf16 %v964_v41, %v963_v20 }
 0xbab   :  { %1330 = vmatmul.mubr.msk.bf16.vlgmr.msra.gmra.mxu0 %vm990_vm6, %v965_v42 }
 0xc6b   :  { %v1028_v25 = vpop.f32.mrf.mxu0 }
 0xc6c   :  { %v1035_v45 = vadd.f32 %v1028_v25, %v1690_v32 }
 0xc6d   :  { %v1331_v49 = vpop.f32.mrf.mxu0 }
 0xc6e   :  { %v1041_v50 = vadd.f32 %v1040_v44, %v1035_v45 }
 0xc6f   :  { %v1031_v51 = vpop.f32.mrf.mxu0 }
 0xc70   :  { %v1036_v53 = vadd.f32 %v1031_v51, %v1695_v37  ;;  %v1043_v54 = vsel %vm230_vm4, %v1041_v50, 0.0 }
 0xc71   :  { %1044 = vadd.xlane.f32.xlu0 %v1043_v54  ;;  %v1332_v55 = vpop.f32.mrf.mxu0 }
 0xc72   :  { %v1042_v56 = vadd.f32 %v1040_v44, %v1036_v53 }
 0xc74   :  { %v1046_v57 = vsel %vm230_vm4, %v1042_v56, 0.0 }
 0xc75   :  { %1047 = vadd.xlane.f32.xlu1 %v1046_v57 }
 0xcfa   :  { %v1045_v58 = vpop.xlane.xlu0 %1044 }
 0xcfb   :  { %v1049_v59 = vmul.f32 0.03125, %v1045_v58 }
 0xcfd   :  { %v1051_v60 = vsub.f32 %v1041_v50, %v1049_v59 }
 0xcfe   :  { %v1048_v48 = vpop.xlane.xlu1 %1047 }
 0xcff   :  { %v1050_v61 = vmul.f32 0.03125, %v1048_v48  ;;  %v1053_v62 = vmul.f32 %v1051_v60, %v1051_v60 }
 0xd01   :  { %v1052_v32 = vsub.f32 %v1042_v56, %v1050_v61  ;;  %v1055_v63 = vsel %vm230_vm4, %v1053_v62, 0.0 }
 0xd02   :  { %1056 = vadd.xlane.f32.xlu0 %v1055_v63 }
 0xd03   :  { %v1054_v2 = vmul.f32 %v1052_v32, %v1052_v32 }
 0xd05   :  { %v1058_v37 = vsel %vm230_vm4, %v1054_v2, 0.0 }
 0xd06   :  { %1059 = vadd.xlane.f32.xlu1 %v1058_v37 }
 0xd8b   :  { %v1057_v6 = vpop.xlane.xlu0 %1056 }
 0xd8c   :  { %v1061_v7 = vmul.f32 0.03125, %v1057_v6 }
 0xd8e   :  { %v1063_v8 = vadd.f32 1e-05, %v1061_v7 }
 0xd8f   :  { %v1060_v9 = vpop.xlane.xlu1 %1059 }
 0xd90   :  { %1410 = vrsqrt.f32 %v1063_v8  ;;  %v1062_v10 = vmul.f32 0.03125, %v1060_v9 }
 0xd92   :  { %v1064_v11 = vadd.f32 1e-05, %v1062_v10 }
 0xd94   :  { %1412 = vrsqrt.f32 %v1064_v11 }
 0xd9d   :  { %v1411_v13 = vpop.eup %1410 }
 0xd9e   :  { %v1067_v15 = vmul.f32 %v1411_v13, %v1051_v60 }
 0xda0   :  { %v1073_v1 = vmul.f32 %v1072_v14, %v1067_v15 }
 0xda1   :  { %v1413_v16 = vpop.eup %1412 }
 0xda2   :  { %v1068_v0 = vmul.f32 %v1413_v16, %v1052_v32  ;;  %v1079_v4 = vadd.f32 %v1078_v17, %v1073_v1 }
 0xda4   :  { %v1074_v18 = vmul.f32 %v1072_v14, %v1068_v0 }
 0xda6   :  { %v1080_v19 = vadd.f32 %v1078_v17, %v1074_v18 }
 0xda8   :  { %v1081_v21 = vpack.c.bf16 %v1080_v19, %v1079_v4 }
 0xdaa   :  { %1338 = vmatmul.mubr.msk.bf16.vlgmr.msra.gmra.mxu1 %vm230_vm4, %v1081_v21 }
 0xe6a   :  { %v1131_v22 = vpop.f32.mrf.mxu1 }
 0xe6b   :  { %1138 = vst [vmem:[#allocation10] sm:$0xff] %v1131_v22 }
 0xe6c   :  { %v1339_v23 = vpop.f32.mrf.mxu1 }
 0xe6e   :  { %v1134_v47 = vpop.f32.mrf.mxu1 }
 0xe6f   :  { %1139 = vst [vmem:[#allocation10 + $0x8] sm:$0xff] %v1134_v47 }
 0xe70   :  { %v1340_v24 = vpop.f32.mrf.mxu1 }
 0xe71   :  { %1505 = shalt.err (!%p1502_p10)
}
 0xe72   :  { %1151 = dma.vmem_to_hbm [thread:$0]  %s1146_s17, 256, %s1740_s4, [#allocation4], %s1530_s0, %s1530_s0, %s1531_s10  }
 0xe73   :  { %1520 = dma.done.wait [#allocation4], 256  }
 0xe74   :  { %1521 = vsyncadd [#allocation4], 4294967040 }
 0xe75   :  { %1155 = vsyncpa [#allocation3], 1 }
 0xe76   :  { %1156 = vsyncpa [#allocation6], 1 }
 0xe77   :  { %1157 = vsyncpa [#allocation9], 1 }
 0xe78   :  { %1158 = vsyncpa [#allocation4], 1 }

</bundles_post_ra>
